<compile_context>
chip_gen: v7x
topology: tpu7x:2x2x1
jax: 0.10.0
libtpu: 0.0.40
codegen_flags: <defaults>
</compile_context>

<pallas_src>
import functools

import jax
import jax.numpy as jnp
from jax.experimental import pallas as pl
from jax.experimental.pallas import tpu as pltpu


def _round_up(v, m):
    return ((v + m - 1) // m) * m


def _center_loss_kernel(ids_ref,    # VMEM: (tb, 1) int32 batch ids (padded rows = -1)
                        x_ref,      # VMEM: (tb, D) feature tile, f32
                        label_ref,  # VMEM: (Np, Cp) label table, bf16 (resident)
                        ct_ref,     # VMEM: (D, Cp) centers^T, f32 (resident)
                        out_ref,    # VMEM: (1, 1, 2) packed [loss, size] for this parallel slice
                        acc_ref,    # VMEM scratch: (1, 2) running [loss, size]
                        c_sq_ref,   # VMEM scratch: (1, Cp) ||c_j||^2, lane oriented
                        *, batch_size, num_classes, tiles_per_core):
    p = pl.program_id(0)            # parallel (megacore) axis over tile groups
    i = pl.program_id(1)            # reduction axis over batch tiles
    tb = x_ref.shape[0]
    n_pad = label_ref.shape[0]
    c_pad = ct_ref.shape[1]

    # One-time init per core sweep (scratch is per-core, so key on i only).
    @pl.when(i == 0)
    def _init():
        acc_ref[...] = jnp.zeros_like(acc_ref)
        c = ct_ref[...]
        c_sq_ref[...] = jnp.sum(c * c, axis=0, keepdims=True)        # (1, Cp)

    # --- distance tile --------------------------------------------------------
    x = x_ref[...]                                                    # (tb, D) f32
    x_sq = jnp.sum(x * x, axis=1, keepdims=True)                      # (tb, 1)
    xc = jax.lax.dot_general(                                         # (tb, Cp) on MXU
        x, ct_ref[...],
        dimension_numbers=(((1,), (0,)), ((), ())),
        preferred_element_type=jnp.float32)
    distmat = x_sq + c_sq_ref[...] - 2.0 * xc                         # (tb, Cp)

    # --- fused mask gather via one-hot MXU matmul -----------------------------
    ids = ids_ref[...]                                                # (tb, 1) int32
    iota_n = jax.lax.broadcasted_iota(jnp.int32, (tb, n_pad), 1)
    onehot = jnp.where(ids == iota_n, 1.0, 0.0).astype(label_ref.dtype)
    # Out-of-range ids (incl. the -1 batch padding) -> all-zero one-hot row.
    mask = jnp.dot(onehot, label_ref[...],
                   preferred_element_type=jnp.float32)                # (tb, Cp) f32

    # --- validity mask (batch-row padding + class-column padding) ------------
    row_ids = ((p * tiles_per_core + i) * tb
               + jax.lax.broadcasted_iota(jnp.int32, (tb, 1), 0))
    col_ids = jax.lax.broadcasted_iota(jnp.int32, (1, c_pad), 1)
    valid = jnp.logical_and(row_ids < batch_size, col_ids < num_classes)

    # torch quirk kept: clamp AFTER masking (mask==0 entries contribute 1e-12),
    # applied to exactly the real B x C grid.
    contrib = jnp.where(valid, jnp.clip(distmat * mask, 1e-12, 1.0e12), 0.0)

    acc_ref[...] += jnp.concatenate(
        [jnp.sum(contrib, keepdims=True),    # (1, 1) tile loss
         jnp.sum(mask, keepdims=True)],      # (1, 1) tile size (padded rows/cols are 0)
        axis=1)

    # Write the packed [loss, size] output once per core sweep (not per step).
    @pl.when(i == pl.num_programs(1) - 1)
    def _store():
        out_ref[0] = acc_ref[...]


def center_loss_forward(x, centers, label, batch):
    """CenterLoss forward: gather + distance + masked clamped sum, fully fused."""
    B, D = x.shape
    C = centers.shape[0]
    N = label.shape[0]

    c_pad = _round_up(C, 128)        # lane-dense class dim
    n_pad = _round_up(N, 128)        # lane-dense one-hot contraction dim

    # Batch tile: up to 512 rows (amortizes ~0.35 us per-grid-step overhead and
    # feeds the MXU taller LHS blocks), multiple of 8 sublanes.
    tb = min(512, _round_up(B, 8))
    num_tiles = pl.cdiv(B, tb)
    # Leading "parallel" axis so v7x's two TensorCores split the batch tiles
    # (neutral on single-TC v5e/v6e).
    P = 2 if num_tiles >= 2 else 1
    T = pl.cdiv(num_tiles, P)
    b_pad = P * T * tb

    x = x.astype(jnp.float32)
    ids = batch.astype(jnp.int32)
    if b_pad != B:
        x = jnp.pad(x, ((0, b_pad - B), (0, 0)))
        # Pad ids with -1: out of iota range -> all-zero one-hot -> zero mask row.
        ids = jnp.pad(ids, (0, b_pad - B), constant_values=-1)
    ids = ids.reshape(b_pad, 1)

    # Centers pre-transposed to (D, Cp): canonical MN-form matmul, no in-kernel
    # relayout; padded columns are zero (excluded from loss via the col mask).
    centers_t = jnp.pad(centers.astype(jnp.float32).T, ((0, 0), (0, c_pad - C)))
    # Label table stored bf16 (0/1 values are exact): halves resident VMEM/DMA.
    label_p = jnp.pad(label, ((0, n_pad - N), (0, c_pad - C))).astype(jnp.bfloat16)

    # TODO(synk): for label tables too large for VMEM, keep `label` in
    # memory_space=pl.ANY and DMA-gather only the tb needed rows per tile
    # (double-buffered); also single-buffer the constant-index resident
    # label/centers blocks (pipeline_mode=pl.Buffered(1)) to halve their
    # footprint on v7x's 64 MiB VMEM.
    out = pl.pallas_call(
        functools.partial(_center_loss_kernel,
                          batch_size=B, num_classes=C, tiles_per_core=T),
        out_shape=jax.ShapeDtypeStruct((P, 1, 2), jnp.float32),
        grid_spec=pltpu.PrefetchScalarGridSpec(
            num_scalar_prefetch=0,
            grid=(P, T),
            in_specs=[
                pl.BlockSpec((tb, 1), lambda p, i: (p * T + i, 0)),    # batch ids tile
                pl.BlockSpec((tb, D), lambda p, i: (p * T + i, 0)),    # x tile
                pl.BlockSpec((n_pad, c_pad), lambda p, i: (0, 0)),     # label table (resident)
                pl.BlockSpec((D, c_pad), lambda p, i: (0, 0)),         # centers^T (resident)
            ],
            out_specs=pl.BlockSpec((1, 1, 2), lambda p, i: (p, 0, 0)),
            scratch_shapes=[pltpu.VMEM((1, 2), jnp.float32),
                            pltpu.VMEM((1, c_pad), jnp.float32)],
        ),
        compiler_params=pltpu.CompilerParams(
            dimension_semantics=("parallel", "arbitrary"),
        ),
    )(ids, x, label_p, centers_t)

    loss = jnp.sum(out[:, 0, 0])
    size = jnp.sum(out[:, 0, 1])
    return loss, size


def xavier_uniform(key, shape, dtype=jnp.float32, gain=1.0):
    fan_out, fan_in = shape  # embedding weight (num_classes, feat_dim)
    bound = gain * jnp.sqrt(6.0 / (fan_in + fan_out))
    return jax.random.uniform(key, shape, dtype, minval=-bound, maxval=bound)


def _reference(x, centers, label, batch):
    mask = jnp.take(label, batch, axis=0).astype(jnp.float32)
    distmat = (
        jnp.sum(x ** 2, axis=1, keepdims=True)
        + jnp.sum(centers ** 2, axis=1)[None, :]
        - 2.0 * x @ centers.T
    )
    loss = jnp.sum(jnp.clip(distmat * mask, 1e-12, 1.0e12))
    size = jnp.sum(mask)
    return loss, size


if __name__ == "__main__":
    num_classes = 16
    feat_dim = 32
    batch_size = 8
    num_nodes = 20  # stands in for n_users + m_items (rows of the label table)

    key = jax.random.PRNGKey(0)
    k_x, k_c, k_lbl, k_b = jax.random.split(key, 4)

    # Deterministic parameter init (synthetic stand-in for centlabel_*.npy and
    # the xavier-initialized embedding weight — no file loads).
    centers = xavier_uniform(k_c, (num_classes, feat_dim))                                    # (C, D)
    label = jax.random.bernoulli(k_lbl, 0.3, (num_nodes, num_classes)).astype(jnp.int32)      # (N, C)

    # Inputs to forward.
    x = jax.random.normal(k_x, (batch_size, feat_dim), dtype=jnp.float32)                     # (B, D)
    batch = jax.random.randint(k_b, (batch_size,), 0, num_nodes, dtype=jnp.int32)

    loss, size = center_loss_forward(x, centers, label, batch)
    jax.block_until_ready((loss, size))

    loss_ref, size_ref = _reference(x, centers, label, batch)
    assert jnp.allclose(loss, loss_ref, rtol=1e-5, atol=1e-5), (loss, loss_ref)
    assert jnp.allclose(size, size_ref), (size, size_ref)

    # Second check: batch size not a multiple of the 8-row sublane tile,
    # exercising the in-kernel row-padding mask and -1 id padding.
    x2 = x[:5]
    batch2 = batch[:5]
    loss2, size2 = center_loss_forward(x2, centers, label, batch2)
    jax.block_until_ready((loss2, size2))
    loss2_ref, size2_ref = _reference(x2, centers, label, batch2)
    assert jnp.allclose(loss2, loss2_ref, rtol=1e-5, atol=1e-5), (loss2, loss2_ref)
    assert jnp.allclose(size2, size2_ref), (size2, size2_ref)

    print("KERNEL_OK")
</pallas_src>

<mosaic_0001>
module attributes {stable_mosaic.version = 11 : i64} {
  func.func @_center_loss_kernel(%arg0: i32, %arg1: i32, %arg2: memref<8x1xi32, #tpu.memory_space<vmem>>, %arg3: memref<8x32xf32, #tpu.memory_space<vmem>>, %arg4: memref<128x128xbf16, #tpu.memory_space<vmem>>, %arg5: memref<32x128xf32, #tpu.memory_space<vmem>>, %arg6: memref<1x1x2xf32, #tpu.memory_space<vmem>>, %arg7: memref<1x2xf32, #tpu.memory_space<vmem>>, %arg8: memref<1x128xf32, #tpu.memory_space<vmem>>) attributes {dimension_semantics = [#tpu.dimension_semantics<parallel>, #tpu.dimension_semantics<arbitrary>], iteration_bounds = array<i64: 1, 1>, scalar_prefetch = 0 : i64, scratch_operands = 2 : i64, tpu.core_type = #tpu.core_type<tc>, window_params = [{transform_indices = @transform_0, window_bounds = array<i64: 8, 1>}, {transform_indices = @transform_1, window_bounds = array<i64: 8, 32>}, {pipeline_mode = #tpu.pipeline_mode<synchronous>, transform_indices = @transform_2, window_bounds = array<i64: 128, 128>}, {pipeline_mode = #tpu.pipeline_mode<synchronous>, transform_indices = @transform_3, window_bounds = array<i64: 32, 128>}, {transform_indices = @transform_4, window_bounds = array<i64: 1, 1, 2>}]} {
    %c0_i32 = arith.constant 0 : i32
    %0 = arith.cmpi eq, %arg1, %c0_i32 : i32
    %1 = arith.extui %0 : i1 to i32
    %c0_i32_0 = arith.constant 0 : i32
    %2 = arith.cmpi ne, %1, %c0_i32_0 : i32
    scf.if %2 {
      %cst_27 = arith.constant 0.000000e+00 : f32
      %64 = vector.broadcast %cst_27 : f32 to vector<1x2xf32>
      %c0_28 = arith.constant 0 : index
      %c0_29 = arith.constant 0 : index
      %65 = vector.load %arg7[%c0_28, %c0_29] : memref<1x2xf32, #tpu.memory_space<vmem>>, vector<1x2xf32>
      tpu.vector_store %arg7[%c0_28, %c0_29], %64 {strides = array<i32>} : memref<1x2xf32, #tpu.memory_space<vmem>>, vector<1x2xf32>,
      %c0_30 = arith.constant 0 : index
      %c0_31 = arith.constant 0 : index
      %66 = vector.load %arg5[%c0_30, %c0_31] : memref<32x128xf32, #tpu.memory_space<vmem>>, vector<32x128xf32>
      %67 = arith.mulf %66, %66 : vector<32x128xf32>
      %cst_32 = arith.constant dense<0.000000e+00> : vector<128xf32>
      %68 = vector.multi_reduction <add>, %67, %cst_32 [0] : vector<32x128xf32> to vector<128xf32>
      %69 = vector.shape_cast %68 : vector<128xf32> to vector<1x128xf32>
      %c0_33 = arith.constant 0 : index
      %c0_34 = arith.constant 0 : index
      %70 = vector.load %arg8[%c0_33, %c0_34] : memref<1x128xf32, #tpu.memory_space<vmem>>, vector<1x128xf32>
      tpu.vector_store %arg8[%c0_33, %c0_34], %69 {strides = array<i32>} : memref<1x128xf32, #tpu.memory_space<vmem>>, vector<1x128xf32>,
    } else {
    }
    %c0 = arith.constant 0 : index
    %c0_1 = arith.constant 0 : index
    %3 = vector.load %arg3[%c0, %c0_1] : memref<8x32xf32, #tpu.memory_space<vmem>>, vector<8x32xf32>
    %4 = arith.mulf %3, %3 : vector<8x32xf32>
    %cst = arith.constant dense<0.000000e+00> : vector<8xf32>
    %5 = vector.multi_reduction <add>, %4, %cst [1] : vector<8x32xf32> to vector<8xf32>
    %6 = vector.shape_cast %5 : vector<8xf32> to vector<8x1xf32>
    %c0_2 = arith.constant 0 : index
    %c0_3 = arith.constant 0 : index
    %7 = vector.load %arg5[%c0_2, %c0_3] : memref<32x128xf32, #tpu.memory_space<vmem>>, vector<32x128xf32>
    %cst_4 = arith.constant dense<0.000000e+00> : vector<8x128xf32>
    %8 = tpu.matmul %3, %7, %cst_4 {dimension_numbers = #tpu.dot_dimension_numbers<[1], [0], [0], [1], [0, 0, 1, 1], [], []>} : vector<8x32xf32>, vector<32x128xf32>, vector<8x128xf32> -> vector<8x128xf32>
    %c0_5 = arith.constant 0 : index
    %c0_6 = arith.constant 0 : index
    %9 = vector.load %arg8[%c0_5, %c0_6] : memref<1x128xf32, #tpu.memory_space<vmem>>, vector<1x128xf32>
    %10 = vector.broadcast %6 : vector<8x1xf32> to vector<8x128xf32>
    %11 = vector.broadcast %9 : vector<1x128xf32> to vector<8x128xf32>
    %12 = arith.addf %10, %11 : vector<8x128xf32>
    %cst_7 = arith.constant 2.000000e+00 : f32
    %13 = vector.broadcast %cst_7 : f32 to vector<8x128xf32>
    %14 = arith.mulf %13, %8 : vector<8x128xf32>
    %15 = arith.subf %12, %14 : vector<8x128xf32>
    %c0_8 = arith.constant 0 : index
    %c0_9 = arith.constant 0 : index
    %16 = vector.load %arg2[%c0_8, %c0_9] : memref<8x1xi32, #tpu.memory_space<vmem>>, vector<8x1xi32>
    %17 = tpu.iota {dimensions = array<i32: 1>} : vector<8x128xi32>
    %18 = vector.broadcast %16 : vector<8x1xi32> to vector<8x128xi32>
    %19 = arith.cmpi eq, %18, %17 : vector<8x128xi32>
    %cst_10 = arith.constant 1.000000e+00 : f32
    %cst_11 = arith.constant 0.000000e+00 : f32
    %20 = vector.broadcast %cst_10 : f32 to vector<8x128xf32>
    %21 = vector.broadcast %cst_11 : f32 to vector<8x128xf32>
    %22 = arith.select %19, %20, %21 : vector<8x128xi1>, vector<8x128xf32>
    %23 = arith.truncf %22 : vector<8x128xf32> to vector<8x128xbf16>
    %c0_12 = arith.constant 0 : index
    %c0_13 = arith.constant 0 : index
    %24 = vector.load %arg4[%c0_12, %c0_13] : memref<128x128xbf16, #tpu.memory_space<vmem>>, vector<128x128xbf16>
    %cst_14 = arith.constant dense<0.000000e+00> : vector<8x128xf32>
    %25 = tpu.matmul %23, %24, %cst_14 {dimension_numbers = #tpu.dot_dimension_numbers<[1], [0], [0], [1], [0, 0, 1, 1], [], []>} : vector<8x128xbf16>, vector<128x128xbf16>, vector<8x128xf32> -> vector<8x128xf32>
    %c1_i32 = arith.constant 1 : i32
    %26 = arith.muli %arg0, %c1_i32 : i32
    %27 = arith.addi %26, %arg1 : i32
    %c8_i32 = arith.constant 8 : i32
    %28 = arith.muli %27, %c8_i32 : i32
    %29 = tpu.iota {dimensions = array<i32: 0>} : vector<8x1xi32>
    %30 = vector.broadcast %28 : i32 to vector<8x1xi32>
    %31 = arith.addi %30, %29 : vector<8x1xi32>
    %32 = tpu.iota {dimensions = array<i32: 1>} : vector<1x128xi32>
    %c8_i32_15 = arith.constant 8 : i32
    %33 = vector.broadcast %c8_i32_15 : i32 to vector<8x1xi32>
    %34 = arith.cmpi slt, %31, %33 : vector<8x1xi32>
    %c16_i32 = arith.constant 16 : i32
    %35 = vector.broadcast %c16_i32 : i32 to vector<1x128xi32>
    %36 = arith.cmpi slt, %32, %35 : vector<1x128xi32>
    %37 = vector.broadcast %34 : vector<8x1xi1> to vector<8x128xi1>
    %38 = vector.broadcast %36 : vector<1x128xi1> to vector<8x128xi1>
    %39 = arith.andi %37, %38 : vector<8x128xi1>
    %40 = arith.mulf %15, %25 : vector<8x128xf32>
    %cst_16 = arith.constant 9.99999996E-13 : f32
    %cst_17 = arith.constant 9.99999995E+11 : f32
    %41 = vector.broadcast %cst_16 : f32 to vector<8x128xf32>
    %42 = arith.maximumf %41, %40 : vector<8x128xf32>
    %43 = vector.broadcast %cst_17 : f32 to vector<8x128xf32>
    %44 = arith.minimumf %43, %42 : vector<8x128xf32>
    %cst_18 = arith.constant 0.000000e+00 : f32
    %45 = vector.broadcast %cst_18 : f32 to vector<8x128xf32>
    %46 = arith.select %39, %44, %45 : vector<8x128xi1>, vector<8x128xf32>
    %c0_19 = arith.constant 0 : index
    %c0_20 = arith.constant 0 : index
    %47 = vector.load %arg7[%c0_19, %c0_20] : memref<1x2xf32, #tpu.memory_space<vmem>>, vector<1x2xf32>
    %48 = vector.shape_cast %46 : vector<8x128xf32> to vector<1x8x128xf32>
    %cst_21 = arith.constant dense<0.000000e+00> : vector<1xf32>
    %49 = vector.multi_reduction <add>, %48, %cst_21 [1, 2] : vector<1x8x128xf32> to vector<1xf32>
    %50 = vector.shape_cast %49 : vector<1xf32> to vector<1x1x1xf32>
    %51 = vector.extract %50[0, 0, 0] : f32 from vector<1x1x1xf32>
    %52 = vector.broadcast %51 : f32 to vector<1x1xf32>
    %53 = vector.shape_cast %25 : vector<8x128xf32> to vector<1x8x128xf32>
    %cst_22 = arith.constant dense<0.000000e+00> : vector<1xf32>
    %54 = vector.multi_reduction <add>, %53, %cst_22 [1, 2] : vector<1x8x128xf32> to vector<1xf32>
    %55 = vector.shape_cast %54 : vector<1xf32> to vector<1x1x1xf32>
    %56 = vector.extract %55[0, 0, 0] : f32 from vector<1x1x1xf32>
    %57 = vector.broadcast %56 : f32 to vector<1x1xf32>
    %58 = tpu.concatenate %52, %57 in 1 : vector<1x1xf32>, vector<1x1xf32> -> vector<1x2xf32>
    %59 = arith.addf %47, %58 : vector<1x2xf32>
    %c0_23 = arith.constant 0 : index
    %c0_24 = arith.constant 0 : index
    %60 = vector.load %arg7[%c0_23, %c0_24] : memref<1x2xf32, #tpu.memory_space<vmem>>, vector<1x2xf32>
    tpu.vector_store %arg7[%c0_23, %c0_24], %59 {strides = array<i32>} : memref<1x2xf32, #tpu.memory_space<vmem>>, vector<1x2xf32>,
    %c0_i32_25 = arith.constant 0 : i32
    %61 = arith.cmpi eq, %arg1, %c0_i32_25 : i32
    %62 = arith.extui %61 : i1 to i32
    %c0_i32_26 = arith.constant 0 : i32
    %63 = arith.cmpi ne, %62, %c0_i32_26 : i32
    scf.if %63 {
      %c0_27 = arith.constant 0 : index
      %c0_28 = arith.constant 0 : index
      %64 = vector.load %arg7[%c0_27, %c0_28] : memref<1x2xf32, #tpu.memory_space<vmem>>, vector<1x2xf32>
      %c0_29 = arith.constant 0 : index
      %c0_30 = arith.constant 0 : index
      %c0_31 = arith.constant 0 : index
      %65 = vector.load %arg6[%c0_29, %c0_30, %c0_31] : memref<1x1x2xf32, #tpu.memory_space<vmem>>, vector<1x1x2xf32>
      %66 = vector.shape_cast %65 : vector<1x1x2xf32> to vector<1x2xf32>
      %67 = vector.shape_cast %64 : vector<1x2xf32> to vector<1x1x2xf32>
      tpu.vector_store %arg6[%c0_29, %c0_30, %c0_31], %67 {strides = array<i32>} : memref<1x1x2xf32, #tpu.memory_space<vmem>>, vector<1x1x2xf32>,
    } else {
    }
    return
  }
  func.func @transform_0(%arg0: i32, %arg1: i32) -> (i32, i32) {
    %c1_i32 = arith.constant 1 : i32
    %0 = arith.muli %arg0, %c1_i32 : i32
    %1 = arith.addi %0, %arg1 : i32
    %c0_i32 = arith.constant 0 : i32
    %c0_i32_0 = arith.constant 0 : i32
    return %1, %c0_i32 : i32, i32
  }
  func.func @transform_1(%arg0: i32, %arg1: i32) -> (i32, i32) {
    %c1_i32 = arith.constant 1 : i32
    %0 = arith.muli %arg0, %c1_i32 : i32
    %1 = arith.addi %0, %arg1 : i32
    %c0_i32 = arith.constant 0 : i32
    %c0_i32_0 = arith.constant 0 : i32
    return %1, %c0_i32 : i32, i32
  }
  func.func @transform_2(%arg0: i32, %arg1: i32) -> (i32, i32) {
    %c0_i32 = arith.constant 0 : i32
    %c0_i32_0 = arith.constant 0 : i32
    %c0_i32_1 = arith.constant 0 : i32
    return %c0_i32, %c0_i32_0 : i32, i32
  }
  func.func @transform_3(%arg0: i32, %arg1: i32) -> (i32, i32) {
    %c0_i32 = arith.constant 0 : i32
    %c0_i32_0 = arith.constant 0 : i32
    %c0_i32_1 = arith.constant 0 : i32
    return %c0_i32, %c0_i32_0 : i32, i32
  }
  func.func @transform_4(%arg0: i32, %arg1: i32) -> (i32, i32, i32) {
    %c0_i32 = arith.constant 0 : i32
    %c0_i32_0 = arith.constant 0 : i32
    %c0_i32_1 = arith.constant 0 : i32
    return %arg0, %c0_i32, %c0_i32_0 : i32, i32, i32
  }
}

</mosaic_0001>

<bundles_post_ra>
// kernel: tpu_custom_call.1
= control target key start
LH: loop header
LB: loop body
LE: loop exit
PB: predicated region body
PF: predicated region fallthrough
CT: control target
= control target key end

     0   :  { %9 = vsyncpa [#allocation5], 0  ;;  %s640_s0 = inlined_call_operand.vmem [shape: s32[8,1], index: 0, kind: input, shape index: {}]   ;;  %s641_s1 = inlined_call_operand.vmem [shape: f32[8,32], index: 1, kind: input, shape index: {}]   ;;  %s642_s2 = inlined_call_operand.hbm [shape: bf16[128,128], index: 2, kind: input, shape index: {}]   ;;  %s643_s3 = inlined_call_operand.hbm [shape: f32[32,128], index: 3, kind: input, shape index: {}]   ;;  %s644_s4 = inlined_call_operand.hbm [shape: f32[1,1,2], index: 4, kind: output, shape index: {}]  }
   0x1   :  { %10 = vsyncpa [#allocation8], 0 }
   0x2   :  { %11 = vsyncpa [#allocation6], 0  ;;  %s547_s15 = smov [#allocation4]   ;;  %s475_s19 = scalar_lea.hbm %s642_s2, 1024 }
   0x3   :  { %s33_s16 = sshll.u32 %s547_s15, 4  ;;  %p476_p0 = scmp.ne.s32.totalorder %s642_s2, %s475_s19  ;;  %s34_s16 = int_to_ptr.vmem [resolvable:$true] %s33_s16 }
   0x4   :  { %p479_p1 = scmp.lt.u32.totalorder %s475_s19, %s642_s2 }
   0x6   :  { %p481_p2 = pnand %p479_p1, %p476_p0 }
   0x8   :  { %484 = shalt.err (!%p481_p2)
}
   0x9   :  { %s485_s24 = scalar_lea.vmem %s34_s16, 1024  ;;  %p490_p4 = scmp.lt.s32.totalorder %s34_s16, %s34_s16 }
   0xa   :  { %p486_p3 = scmp.ne.s32.totalorder %s34_s16, %s485_s24  ;;  %p491_p5 = scmp.lt.s32.totalorder %s485_s24, %s485_s24 }
   0xc   :  { %p492_p6 = por %p491_p5, %p490_p4 }
   0xe   :  { %p493_p7 = pnand %p492_p6, %p486_p3 }
  0x10   :  { %496 = shalt.err (!%p493_p7)
}
  0x11   :  { %s548_s25 = smov 64   ;;  %s549_s26 = smov 4  }
  0x12   :  { %39 = dma.hbm_to_vmem [thread:$0]  %s642_s2, 1024, %s34_s16, [#allocation5], %s548_s25, %s548_s25, %s549_s26  }
  0x13   :  { %s550_s29 = smov [#allocation7]   ;;  %s497_s7 = scalar_lea.hbm %s643_s3, 512 }
  0x14   :  { %s45_s30 = sshll.u32 %s550_s29, 4  ;;  %p498_p8 = scmp.ne.s32.totalorder %s643_s3, %s497_s7  ;;  %s46_s30 = int_to_ptr.vmem [resolvable:$true] %s45_s30 }
  0x15   :  { %p501_p9 = scmp.lt.u32.totalorder %s497_s7, %s643_s3 }
  0x17   :  { %p503_p10 = pnand %p501_p9, %p498_p8 }
  0x19   :  { %506 = shalt.err (!%p503_p10)
}
  0x1a   :  { %s507_s12 = scalar_lea.vmem %s46_s30, 512  ;;  %p512_p12 = scmp.lt.s32.totalorder %s46_s30, %s46_s30 }
  0x1b   :  { %p508_p11 = scmp.ne.s32.totalorder %s46_s30, %s507_s12  ;;  %p513_p13 = scmp.lt.s32.totalorder %s507_s12, %s507_s12 }
  0x1d   :  { %p514_p0 = por %p513_p13, %p512_p12 }
  0x1f   :  { %p515_p1 = pnand %p514_p0, %p508_p11 }
  0x21   :  { %518 = shalt.err (!%p515_p1)
}
  0x22   :  { %s551_s2 = smov 128   ;;  %s552_s13 = smov 8  }
  0x23   :  { %51 = dma.hbm_to_vmem [thread:$0]  %s643_s3, 512, %s46_s30, [#allocation8], %s551_s2, %s551_s2, %s552_s13  }
  0x24   :  { %541 = dma.done.wait [#allocation5], 1024  }
  0x25   :  { %542 = vsyncadd [#allocation5], 4294966272 }
  0x26   :  { %543 = dma.done.wait [#allocation8], 512  }
  0x27   :  { %544 = vsyncadd [#allocation8], 4294966784  ;;  %v553_v0 = vmov 0   ;;  %v554_v1 = vmov 0.0   ;;  %v555_v2 = vmov 0.0|0.0   ;;  %vm556_vm0 = vmmov 0  }
  0x28   :  { %466 = vset.pattern.permute.xlu0 %v553_v0  ;;  %424 = vmatprep.subr.bf16.mxu1 %v554_v1  ;;  %v198_v3 = vld [vmem:[%s640_s0] sm:$0xff]  ;;  %v467_v4 = vld [vmem:[#allocation4] sm:$0xff]   ;;  %v114_v11 = vld [vmem:[#allocation7 + $0x18] sm:$0xff]  ;;  %vm107_vm1 = vcmask 261120   ;;  %v199_v34 = vlaneseq  ;;  %v557_v37 = vmov 1.0|1.0  }
  0x29   :  { %444 = vmatprep.subr.bf16.mxu0 %v555_v2  ;;  %421 = vmatprep.mubr.msk.f32.mxu0 %vm556_vm0, %v554_v1  ;;  %v468_v5 = vld [vmem:[#allocation4 + $0x8] sm:$0xff]   ;;  %v111_v6 = vld [vmem:[#allocation7] sm:$0xff]  ;;  %v469_v8 = vld [vmem:[#allocation4 + $0x10] sm:$0xff]   ;;  %v94_v24 = vmul.f32 %v114_v11, %v114_v11  ;;  %vm85_vm5 = vcmask 8192   ;;  %vm349_vm6 = vcmask 7168   ;;  %s558_s19 = smov [#allocation9]  }
  0x2a   :  { %440 = vmatprep.mubr.msk.bf16.mxu1 %vm556_vm0, %v554_v1  ;;  %202 = vperm.xlu0 %466, %v198_v3   ;;  %v112_v7 = vld [vmem:[#allocation7 + $0x8] sm:$0xff]  ;;  %v113_v10 = vld [vmem:[#allocation7 + $0x10] sm:$0xff]  ;;  %v470_v13 = vld [vmem:[#allocation4 + $0x18] sm:$0xff]   ;;  %v91_v21 = vmul.f32 %v111_v6, %v111_v6  ;;  %v200_v35 = vand.u32 127, %v199_v34  ;;  %86 = vst.msk [vmem:[#allocation2] sm:$0x1] %vm85_vm5, %v554_v1 }
  0x2b   :  { %425 = vmatpush3.bf16.msra.mxu1 %v467_v4  ;;  %v445_v9 = vpack.c.bf16 %v112_v7, %v111_v6  ;;  %v448_v12 = vpack.c.bf16 %v114_v11, %v113_v10  ;;  %v105_v14 = vld [vmem:[%s641_s1] sm:$0xff]  ;;  %v471_v15 = vld [vmem:[#allocation4 + $0x20] sm:$0xff]   ;;  %v474_v19 = vld [vmem:[#allocation4 + $0x38] sm:$0xff]   ;;  %v92_v22 = vmul.f32 %v112_v7, %v112_v7  ;;  %v93_v23 = vmul.f32 %v113_v10, %v113_v10  ;;  %s365_s20 = sshll.u32 %s558_s19, 4  ;;  %s366_s20 = int_to_ptr.vmem [resolvable:$true] %s365_s20 }
  0x2c   :  { %426 = vmatprep.subr.bf16.mxu1 %v554_v1  ;;  %v472_v16 = vld [vmem:[#allocation4 + $0x28] sm:$0xff]   ;;  %v473_v17 = vld [vmem:[#allocation4 + $0x30] sm:$0xff]   ;;  %v106_v18 = vmul.f32 %v105_v14, %v105_v14  ;;  %vm318_vm4 = vcmp.lt.s32.totalorder %v200_v35, 16  ;;  %s519_s21 = scalar_lea.vmem %s366_s20, 16  ;;  %s523_s22 = scalar_lea.vmem %s366_s20, 32 }
  0x2d   :  { %446 = vmatpush3.bf16.msra.mxu0 %v445_v9  ;;  %v95_v25 = vadd.f32 %v92_v22, %v91_v21  ;;  %p520_p2 = scmp.ne.s32.totalorder %s366_s20, %s519_s21  ;;  %p524_p3 = scmp.lt.s32.totalorder %s366_s20, %s366_s20 }
  0x2e   :  { %447 = vmatprep.subr.bf16.mxu0 %v555_v2  ;;  %v108_v20 = vsel %vm107_vm1, %v106_v18, 0.0  ;;  %p525_p4 = scmp.lt.s32.totalorder %s523_s22, %s519_s21 }
  0x2f   :  { %427 = vmatpush3.bf16.msra.mxu1 %v468_v5  ;;  %v96_v26 = vadd.f32 %v95_v25, %v93_v23 }
  0x30   :  { %428 = vmatprep.subr.bf16.mxu1 %v554_v1  ;;  %p526_p5 = por %p525_p4, %p524_p3 }
  0x31   :  { %449 = vmatpush3.bf16.msra.mxu0 %v448_v12  ;;  %v97_v27 = vadd.f32 %v96_v26, %v94_v24  ;;  %v328_v4 = vld [vmem:[#allocation2] sm:$0x1] }
  0x32   :  { %p527_p6 = pnand %p526_p5, %p520_p2 }
  0x33   :  { %429 = vmatpush3.bf16.msra.mxu1 %v469_v8  ;;  %v98_v28 = vrot.slane %v97_v27, 4 }
  0x34   :  { %430 = vmatprep.subr.bf16.mxu1 %v554_v1  ;;  %422 = vmatmul.mubr.msk.f32.vlgmr.msra.gmra.mrb[0].mxu0 %vm107_vm1, %v105_v14 }
  0x35   :  { %v99_v29 = vadd.f32 %v98_v28, %v97_v27 }
  0x37   :  { %431 = vmatpush3.bf16.msra.mxu1 %v470_v13  ;;  %v100_v30 = vrot.slane %v99_v29, 2 }
  0x38   :  { %432 = vmatprep.subr.bf16.mxu1 %v554_v1 }
  0x39   :  { %v101_v31 = vadd.f32 %v100_v30, %v99_v29 }
  0x3b   :  { %433 = vmatpush3.bf16.msra.mxu1 %v471_v15  ;;  %v102_v32 = vrot.slane %v101_v31, 1 }
  0x3c   :  { %434 = vmatprep.subr.bf16.mxu1 %v554_v1 }
  0x3d   :  { %v103_v33 = vadd.f32 %v102_v32, %v101_v31 }
  0x3f   :  { %435 = vmatpush3.bf16.msra.mxu1 %v472_v16  ;;  %104 = vst [vmem:[#allocation3] sm:$0x1] %v103_v33 }
  0x40   :  { %436 = vmatprep.subr.bf16.mxu1 %v554_v1 }
  0x43   :  { %437 = vmatpush3.bf16.msra.mxu1 %v473_v17 }
  0x44   :  { %438 = vmatprep.subr.bf16.mxu1 %v554_v1 }
  0x46   :  { %v388_v41 = vld [vmem:[#allocation3] ss:$0 sm:$0xff] }
  0x47   :  { %439 = vmatpush3.bf16.msra.mxu1 %v474_v19 }
  0x49   :  { %109 = vadd.xlane.f32.xlu0 %v108_v20 }
  0xa9   :  { %v203_v36 = vpop.permute.xlu0 %202 }
  0xaa   :  { %vm204_vm2 = vcmp.eq.s32.totalorder %v203_v36, %v200_v35 }
  0xab   :  { %vm397_vm3 = vmpackc.low %vm204_vm2, %vm204_vm2 }
  0xac   :  { %441 = vmatmul.mubr.msk.bf16.vlgmr.msra.gmra.mrb[0].mxu1 %vm397_vm3, %v557_v37 }
  0xd6   :  { %v110_v40 = vpop.xlane.xlu0 %109 }
  0xd7   :  { %v195_v43 = vadd.f32 %v388_v41, %v110_v40 }
 0x107   :  { %v184_v38 = vpop.f32.mrb[0].mxu0 }
 0x108   :  { %v423_v39 = vpop.f32.mrb[1].mxu0  ;;  %v196_v42 = vmul.f32 2.0, %v184_v38 }
 0x10a   :  { %v197_v44 = vsub.f32 %v195_v43, %v196_v42 }
 0x17f   :  { %v305_v45 = vpop.f32.mrb[0].mxu1 }
 0x180   :  { %v324_v46 = vmul.f32 %v305_v45, %v197_v44  ;;  %v442_v47 = vpop.f32.mrb[1].mxu1 }
 0x181   :  { %v308_v48 = vpop.f32.mrb[2].mxu1 }
 0x182   :  { %v443_v49 = vpop.f32.mrb[3].mxu1  ;;  %v325_v50 = vmax.f32 %v324_v46, 1e-12 }
 0x184   :  { %v326_v51 = vmin.f32 %v325_v50, 1e+12 }
 0x186   :  { %v327_v52 = vsel %vm318_vm4, %v326_v51, 0.0 }
 0x187   :  { %329 = vadd.xlane.f32.xlu1 %v327_v52 }
 0x18b   :  { %339 = vadd.xlane.f32.xlu1 %v305_v45 }
 0x214   :  { %v330_v53 = vpop.xlane.xlu1 %329 }
 0x215   :  { %v331_v54 = vrot.slane %v330_v53, 4 }
 0x217   :  { %v332_v55 = vadd.f32 %v331_v54, %v330_v53 }
 0x218   :  { %v340_v56 = vpop.xlane.xlu1 %339 }
 0x219   :  { %v333_v57 = vrot.slane %v332_v55, 2  ;;  %v341_v58 = vrot.slane %v340_v56, 4 }
 0x21b   :  { %v342_v59 = vadd.f32 %v341_v58, %v340_v56  ;;  %v334_v60 = vadd.f32 %v333_v57, %v332_v55 }
 0x21d   :  { %v343_v61 = vrot.slane %v342_v59, 2  ;;  %v335_v62 = vrot.slane %v334_v60, 1 }
 0x21f   :  { %v344_v63 = vadd.f32 %v343_v61, %v342_v59  ;;  %v336_v0 = vadd.f32 %v335_v62, %v334_v60 }
 0x221   :  { %450 = vpush %v336_v0  ;;  %v345_v2 = vrot.slane %v344_v63, 1 }
 0x223   :  { %v346_v3 = vadd.f32 %v345_v2, %v344_v63 }
 0x225   :  { %452 = vpush %v346_v3 }
 0x252   :  { %s451_s1 = spop %450 }
 0x253   :  { %v338_v1 = vstv %s451_s1 }
 0x256   :  { %s453_s18 = spop %452 }
 0x257   :  { %v348_v5 = vstv %s453_s18 }
 0x258   :  { %v350_v6 = vsel %vm349_vm6, %v338_v1, %v348_v5 }
 0x259   :  { %v351_v7 = vadd.f32 %v350_v6, %v328_v4 }
 0x25b   :  { %353 = vst.msk [vmem:[#allocation2] sm:$0x1] %vm85_vm5, %v351_v7 }
 0x262   :  { %v357_v8 = vld [vmem:[#allocation2] sm:$0x1] }
 0x263   :  { %358 = vst.msk [vmem:[#allocation9] sm:$0x1] %vm85_vm5, %v357_v8 }
 0x264   :  { %530 = shalt.err (!%p527_p6)
}
 0x265   :  { %s531_s25 = scalar_lea.hbm %s644_s4, 16 }
 0x266   :  { %p532_p7 = scmp.ne.s32.totalorder %s644_s4, %s531_s25  ;;  %p535_p8 = scmp.lt.u32.totalorder %s531_s25, %s644_s4 }
 0x268   :  { %p537_p9 = pnand %p535_p8, %p532_p7 }
 0x26a   :  { %540 = shalt.err (!%p537_p9)
}
 0x26b   :  { %368 = dma.vmem_to_hbm [thread:$0]  %s366_s20, 16, %s644_s4, [#allocation6]  }
 0x26c   :  { %545 = dma.done.wait [#allocation6], 16  }
 0x26d   :  { %546 = vsyncadd [#allocation6], 4294967280 }
 0x26e   :  { %372 = vsyncpa [#allocation5], 1 }
 0x26f   :  { %373 = vsyncpa [#allocation8], 1 }
 0x270   :  { %374 = vsyncpa [#allocation6], 1 }

</bundles_post_ra>
